<compile_context>
chip_gen: v7x
topology: tpu7x:2x2x1
jax: 0.10.0
libtpu: 0.0.40
codegen_flags: <defaults>
</compile_context>

<pallas_src>
import functools

import jax
import jax.numpy as jnp
from jax.experimental import pallas as pl
from jax.experimental.pallas import tpu as pltpu


LANE = 128
SUBLANE = 8
# Max batch-tile rows.  512 amortizes per-step overhead well on v5e/v6e while
# keeping the x/out tiles small enough for v7x's 64 MiB VMEM with resident weights.
TM_MAX = 512


def _round_up(x, m):
    return (x + m - 1) // m * m


# ---------------------------------------------------------------------------
# One-time capability probe: can grid-invariant inputs be single-buffered?
# ---------------------------------------------------------------------------
_SINGLE_BUFFER_OK = None


def _single_buffer_weights_supported():
    """Probe once whether pipeline_mode=pl.Buffered(1) works for pallas_call
    BlockSpecs (single-buffers grid-invariant weight blocks, halving their VMEM)."""
    global _SINGLE_BUFFER_OK
    if _SINGLE_BUFFER_OK is None:
        try:
            x = jnp.arange(8 * 128, dtype=jnp.float32).reshape(8, 128)

            def _copy(x_ref, o_ref):
                o_ref[...] = x_ref[...]

            out = pl.pallas_call(
                _copy,
                out_shape=jax.ShapeDtypeStruct((8, 128), jnp.float32),
                grid=(2,),
                in_specs=[pl.BlockSpec((8, 128), lambda i: (0, 0),
                                       pipeline_mode=pl.Buffered(1))],
                out_specs=pl.BlockSpec((8, 128), lambda i: (0, 0)),
            )(x)
            _SINGLE_BUFFER_OK = bool(jnp.array_equal(out, x))
        except Exception:
            _SINGLE_BUFFER_OK = False
    return _SINGLE_BUFFER_OK


# ---------------------------------------------------------------------------
# Parameter preparation (runs ONCE, outside the per-call forward path)
# ---------------------------------------------------------------------------
def prepare_head_params(params):
    """Pad + cast raw (w, b) Linear params once.

    W -> bf16 with the output dim (and hidden input dims) zero-padded to 128
    lanes; b -> f32 (1, N_p).  Layer-0's contraction dim stays the true
    input_dim so x needs no feature padding.  Zero padding is exact: padded
    hidden activations stay exactly 0 through bias + ReLU.
    """
    prepped = []
    prev_np = params[0][0].shape[0]          # layer-0 K = true input_dim
    for w, b in params:
        k, n = w.shape
        k_p, n_p = prev_np, _round_up(n, LANE)
        w_p = jnp.zeros((k_p, n_p), jnp.bfloat16).at[:k, :n].set(w.astype(jnp.bfloat16))
        b_p = jnp.zeros((1, n_p), jnp.float32).at[0, :n].set(b.astype(jnp.float32))
        prepped.append((w_p, b_p))
        prev_np = n_p
    return tuple(prepped)


# ---------------------------------------------------------------------------
# Kernel
# ---------------------------------------------------------------------------
def _make_head_kernel(num_layers):
    """relu(x@W1+b1) -> ... -> relu(.@W_{L-1}+b_{L-1}) -> .@W_L+b_L (eval-mode MLP)."""

    def kernel(x_ref, *refs):
        out_ref = refs[-1]
        wb = refs[:-1]

        # Cast f32 -> bf16 on the VPU, hidden under the x tile DMA.
        h = x_ref[...].astype(jnp.bfloat16)
        for li in range(num_layers):
            w = wb[2 * li][...]        # bf16 (K, N_p), VMEM-resident across the grid
            b = wb[2 * li + 1][...]    # f32  (1, N_p)
            y = jnp.dot(h, w, preferred_element_type=jnp.float32) + b
            if li < num_layers - 1:
                # Dropout is identity in eval; ReLU after every hidden Linear.
                h = jnp.maximum(y, 0.0).astype(jnp.bfloat16)
            else:
                out_ref[...] = y.astype(out_ref.dtype)

    return kernel


# ---------------------------------------------------------------------------
# Wrapper
# ---------------------------------------------------------------------------
def _batch_tiling(B):
    Bp = _round_up(max(B, SUBLANE), SUBLANE)
    # >=2 grid steps when possible so both v7x TensorCores get work; tile up to
    # TM_MAX rows to amortize the ~0.35us per-grid-step overhead on v5e/v6e.
    min_steps = 2 if Bp >= 2 * SUBLANE else 1
    nsteps = max(pl.cdiv(Bp, TM_MAX), min_steps)
    tm = _round_up(pl.cdiv(Bp, nsteps), SUBLANE)
    return tm, nsteps * tm, nsteps


def _vmem_limit_bytes(prepped_params, tm, in_dim, in_itemsize, ncls_p, single_buffer):
    w_factor = 1 if single_buffer else 2
    w_bytes = w_factor * sum(w.size * w.dtype.itemsize + b.size * b.dtype.itemsize
                             for w, b in prepped_params)
    io_bytes = 2 * tm * (in_dim * in_itemsize + ncls_p * 4)        # double-buffered x/out tiles
    act_bytes = sum(tm * w.shape[1] * 6 for w, _ in prepped_params)  # f32 y + bf16 h per layer
    total = w_bytes + io_bytes + act_bytes + (2 << 20)               # headroom
    try:
        cap = int(pltpu.get_tpu_info().vmem_capacity_bytes) * 9 // 10
    except Exception:
        cap = 64 << 20   # safe on every generation (v7x physical VMEM = 64 MiB)
    return int(min(max(total, 32 << 20), cap))


@functools.partial(jax.jit, static_argnames=("n_class", "single_buffer_weights"))
def _nonlinear_head_padded(x, prepped_params, n_class, single_buffer_weights):
    B, in_dim = x.shape
    assert in_dim == prepped_params[0][0].shape[0]
    num_layers = len(prepped_params)
    ncls_p = prepped_params[-1][0].shape[1]

    tm, Bp, nsteps = _batch_tiling(B)
    if Bp != B:
        x = jnp.pad(x, ((0, Bp - B), (0, 0)))   # rows only; feature dim stays unpadded f32

    w_mode = {"pipeline_mode": pl.Buffered(1)} if single_buffer_weights else {}

    operands = [x]
    in_specs = [pl.BlockSpec((tm, in_dim), lambda i: (i, 0))]
    for w_p, b_p in prepped_params:
        operands += [w_p, b_p]
        # Grid-invariant (VMEM-resident) weights/biases; single-buffered when supported.
        in_specs += [
            pl.BlockSpec(w_p.shape, lambda i: (0, 0), **w_mode),
            pl.BlockSpec(b_p.shape, lambda i: (0, 0), **w_mode),
        ]

    out_p = pl.pallas_call(
        _make_head_kernel(num_layers),
        out_shape=jax.ShapeDtypeStruct((Bp, ncls_p), jnp.float32),
        grid=(nsteps,),
        in_specs=in_specs,
        out_specs=pl.BlockSpec((tm, ncls_p), lambda i: (i, 0)),
        compiler_params=pltpu.CompilerParams(
            dimension_semantics=("parallel",),
            vmem_limit_bytes=_vmem_limit_bytes(
                prepped_params, tm, in_dim, x.dtype.itemsize, ncls_p,
                single_buffer_weights),
        ),
    )(*operands)

    return out_p[:B, :n_class]


def nonlinear_head_pallas(x, prepped_params, n_class):
    """Apply the MLP head: x (B, input_dim) f32 -> logits (B, n_class) f32."""
    return _nonlinear_head_padded(
        x, prepped_params, n_class,
        single_buffer_weights=_single_buffer_weights_supported())


def classifier_head_forward(labeled_input, prepped_params, n_class, unlabeled_input=None):
    """Eval-mode ClassifierHead.forward: returns (logits_list, loss_dict)."""
    loss_dict = {}
    if unlabeled_input is None:
        return [nonlinear_head_pallas(labeled_input, prepped_params, n_class)], loss_dict

    bl, bu = labeled_input.shape[0], unlabeled_input.shape[0]
    if bl + bu <= 2 * TM_MAX:
        # Small batches: one fused call (one launch, one weight DMA), split after.
        logits = nonlinear_head_pallas(
            jnp.concatenate([labeled_input, unlabeled_input], axis=0),
            prepped_params, n_class)
        return [logits[:bl], logits[bl:bl + bu]], loss_dict

    # Large batches: keep separate calls (avoids the concat HBM round trip).
    return [nonlinear_head_pallas(labeled_input, prepped_params, n_class),
            nonlinear_head_pallas(unlabeled_input, prepped_params, n_class)], loss_dict


# ---------------------------------------------------------------------------
# Init + pure-JAX reference (same bf16-operand / f32-accumulate recipe)
# ---------------------------------------------------------------------------
def init_params(key, input_dim, hidden_dims, n_class):
    """PyTorch nn.Linear-style init; weights stored as (in_dim, out_dim)."""
    dims = [input_dim] + list(hidden_dims) + [n_class]
    params = []
    for i in range(len(dims) - 1):
        fan_in, fan_out = dims[i], dims[i + 1]
        key, kw, kb = jax.random.split(key, 3)
        bound = 1.0 / jnp.sqrt(fan_in)
        w = jax.random.uniform(kw, (fan_in, fan_out), jnp.float32, -bound, bound)
        b = jax.random.uniform(kb, (fan_out,), jnp.float32, -bound, bound)
        params.append((w, b))
    return tuple(params)


def _ref_head(x, params):
    h = x.astype(jnp.bfloat16)
    num_layers = len(params)
    for li, (w, b) in enumerate(params):
        y = jnp.dot(h, w.astype(jnp.bfloat16), preferred_element_type=jnp.float32) + b
        if li < num_layers - 1:
            h = jnp.maximum(y, 0.0).astype(jnp.bfloat16)
        else:
            return y


if __name__ == "__main__":
    B_labeled = 8
    B_unlabeled = 6
    input_dim = 32
    hidden_dims = [64, 48]
    n_class = 10

    key = jax.random.PRNGKey(0)
    k1, k2, kp = jax.random.split(key, 3)
    labeled = jax.random.normal(k1, (B_labeled, input_dim), jnp.float32)
    unlabeled = jax.random.normal(k2, (B_unlabeled, input_dim), jnp.float32)
    params = init_params(kp, input_dim, hidden_dims, n_class)

    # Pad + cast weights ONCE (outside the per-call forward path).
    prepped = prepare_head_params(params)

    logits_list, loss_dict = classifier_head_forward(
        labeled, prepped, n_class, unlabeled_input=unlabeled
    )
    jax.block_until_ready(logits_list)

    labeled_logits, unlabeled_logits = logits_list
    assert labeled_logits.shape == (B_labeled, n_class)
    assert unlabeled_logits.shape == (B_unlabeled, n_class)
    assert loss_dict == {}

    ref_l = _ref_head(labeled, params)
    ref_u = _ref_head(unlabeled, params)
    assert jnp.allclose(labeled_logits, ref_l, atol=2e-2, rtol=2e-2), (
        float(jnp.max(jnp.abs(labeled_logits - ref_l)))
    )
    assert jnp.allclose(unlabeled_logits, ref_u, atol=2e-2, rtol=2e-2), (
        float(jnp.max(jnp.abs(unlabeled_logits - ref_u)))
    )

    # Also exercise the labeled-only (single-input) path.
    (single_logits,), _ = classifier_head_forward(labeled, prepped, n_class)
    jax.block_until_ready(single_logits)
    assert jnp.allclose(single_logits, ref_l, atol=2e-2, rtol=2e-2)

    print("KERNEL_OK")
</pallas_src>

<mosaic_0001>
module attributes {stable_mosaic.version = 11 : i64} {
  func.func @_copy(%arg0: i32, %arg1: memref<8x128xf32, #tpu.memory_space<vmem>>, %arg2: memref<8x128xf32, #tpu.memory_space<vmem>>) attributes {dimension_semantics = [#tpu.dimension_semantics<arbitrary>], iteration_bounds = array<i64: 2>, scalar_prefetch = 0 : i64, scratch_operands = 0 : i64, tpu.core_type = #tpu.core_type<tc>, window_params = [{pipeline_mode = #tpu.pipeline_mode<synchronous>, transform_indices = @transform_0, window_bounds = array<i64: 8, 128>}, {pipeline_mode = #tpu.pipeline_mode<synchronous>, transform_indices = @transform_1, window_bounds = array<i64: 8, 128>}]} {
    %c0 = arith.constant 0 : index
    %c0_0 = arith.constant 0 : index
    %0 = vector.load %arg1[%c0, %c0_0] : memref<8x128xf32, #tpu.memory_space<vmem>>, vector<8x128xf32>
    %c0_1 = arith.constant 0 : index
    %c0_2 = arith.constant 0 : index
    %1 = vector.load %arg2[%c0_1, %c0_2] : memref<8x128xf32, #tpu.memory_space<vmem>>, vector<8x128xf32>
    tpu.vector_store %arg2[%c0_1, %c0_2], %0 {strides = array<i32>} : memref<8x128xf32, #tpu.memory_space<vmem>>, vector<8x128xf32>,
    return
  }
  func.func @transform_0(%arg0: i32) -> (i32, i32) {
    %c0_i32 = arith.constant 0 : i32
    %c0_i32_0 = arith.constant 0 : i32
    %c0_i32_1 = arith.constant 0 : i32
    return %c0_i32, %c0_i32_0 : i32, i32
  }
  func.func @transform_1(%arg0: i32) -> (i32, i32) {
    %c0_i32 = arith.constant 0 : i32
    %c0_i32_0 = arith.constant 0 : i32
    %c0_i32_1 = arith.constant 0 : i32
    return %c0_i32, %c0_i32_0 : i32, i32
  }
}

module attributes {stable_mosaic.version = 11 : i64} {
  func.func @kernel(%arg0: i32, %arg1: memref<8x32xf32, #tpu.memory_space<vmem>>, %arg2: memref<32x128xbf16, #tpu.memory_space<vmem>>, %arg3: memref<1x128xf32, #tpu.memory_space<vmem>>, %arg4: memref<128x128xbf16, #tpu.memory_space<vmem>>, %arg5: memref<1x128xf32, #tpu.memory_space<vmem>>, %arg6: memref<128x128xbf16, #tpu.memory_space<vmem>>, %arg7: memref<1x128xf32, #tpu.memory_space<vmem>>, %arg8: memref<8x128xf32, #tpu.memory_space<vmem>>) attributes {dimension_semantics = [#tpu.dimension_semantics<parallel>], iteration_bounds = array<i64: 2>, scalar_prefetch = 0 : i64, scratch_operands = 0 : i64, tpu.core_type = #tpu.core_type<tc>, window_params = [{transform_indices = @transform_0, window_bounds = array<i64: 8, 32>}, {pipeline_mode = #tpu.pipeline_mode<synchronous>, transform_indices = @transform_1, window_bounds = array<i64: 32, 128>}, {pipeline_mode = #tpu.pipeline_mode<synchronous>, transform_indices = @transform_2, window_bounds = array<i64: 1, 128>}, {pipeline_mode = #tpu.pipeline_mode<synchronous>, transform_indices = @transform_3, window_bounds = array<i64: 128, 128>}, {pipeline_mode = #tpu.pipeline_mode<synchronous>, transform_indices = @transform_4, window_bounds = array<i64: 1, 128>}, {pipeline_mode = #tpu.pipeline_mode<synchronous>, transform_indices = @transform_5, window_bounds = array<i64: 128, 128>}, {pipeline_mode = #tpu.pipeline_mode<synchronous>, transform_indices = @transform_6, window_bounds = array<i64: 1, 128>}, {transform_indices = @transform_7, window_bounds = array<i64: 8, 128>}]} {
    %c0 = arith.constant 0 : index
    %c0_0 = arith.constant 0 : index
    %0 = vector.load %arg1[%c0, %c0_0] : memref<8x32xf32, #tpu.memory_space<vmem>>, vector<8x32xf32>
    %1 = arith.truncf %0 : vector<8x32xf32> to vector<8x32xbf16>
    %c0_1 = arith.constant 0 : index
    %c0_2 = arith.constant 0 : index
    %2 = vector.load %arg2[%c0_1, %c0_2] : memref<32x128xbf16, #tpu.memory_space<vmem>>, vector<32x128xbf16>
    %c0_3 = arith.constant 0 : index
    %c0_4 = arith.constant 0 : index
    %3 = vector.load %arg3[%c0_3, %c0_4] : memref<1x128xf32, #tpu.memory_space<vmem>>, vector<1x128xf32>
    %cst = arith.constant dense<0.000000e+00> : vector<8x128xf32>
    %4 = tpu.matmul %1, %2, %cst {dimension_numbers = #tpu.dot_dimension_numbers<[1], [0], [0], [1], [0, 0, 1, 1], [], []>} : vector<8x32xbf16>, vector<32x128xbf16>, vector<8x128xf32> -> vector<8x128xf32>
    %5 = vector.broadcast %3 : vector<1x128xf32> to vector<8x128xf32>
    %6 = arith.addf %4, %5 : vector<8x128xf32>
    %cst_5 = arith.constant 0.000000e+00 : f32
    %7 = vector.broadcast %cst_5 : f32 to vector<8x128xf32>
    %8 = arith.maximumf %6, %7 : vector<8x128xf32>
    %9 = arith.truncf %8 : vector<8x128xf32> to vector<8x128xbf16>
    %c0_6 = arith.constant 0 : index
    %c0_7 = arith.constant 0 : index
    %10 = vector.load %arg4[%c0_6, %c0_7] : memref<128x128xbf16, #tpu.memory_space<vmem>>, vector<128x128xbf16>
    %c0_8 = arith.constant 0 : index
    %c0_9 = arith.constant 0 : index
    %11 = vector.load %arg5[%c0_8, %c0_9] : memref<1x128xf32, #tpu.memory_space<vmem>>, vector<1x128xf32>
    %cst_10 = arith.constant dense<0.000000e+00> : vector<8x128xf32>
    %12 = tpu.matmul %9, %10, %cst_10 {dimension_numbers = #tpu.dot_dimension_numbers<[1], [0], [0], [1], [0, 0, 1, 1], [], []>} : vector<8x128xbf16>, vector<128x128xbf16>, vector<8x128xf32> -> vector<8x128xf32>
    %13 = vector.broadcast %11 : vector<1x128xf32> to vector<8x128xf32>
    %14 = arith.addf %12, %13 : vector<8x128xf32>
    %cst_11 = arith.constant 0.000000e+00 : f32
    %15 = vector.broadcast %cst_11 : f32 to vector<8x128xf32>
    %16 = arith.maximumf %14, %15 : vector<8x128xf32>
    %17 = arith.truncf %16 : vector<8x128xf32> to vector<8x128xbf16>
    %c0_12 = arith.constant 0 : index
    %c0_13 = arith.constant 0 : index
    %18 = vector.load %arg6[%c0_12, %c0_13] : memref<128x128xbf16, #tpu.memory_space<vmem>>, vector<128x128xbf16>
    %c0_14 = arith.constant 0 : index
    %c0_15 = arith.constant 0 : index
    %19 = vector.load %arg7[%c0_14, %c0_15] : memref<1x128xf32, #tpu.memory_space<vmem>>, vector<1x128xf32>
    %cst_16 = arith.constant dense<0.000000e+00> : vector<8x128xf32>
    %20 = tpu.matmul %17, %18, %cst_16 {dimension_numbers = #tpu.dot_dimension_numbers<[1], [0], [0], [1], [0, 0, 1, 1], [], []>} : vector<8x128xbf16>, vector<128x128xbf16>, vector<8x128xf32> -> vector<8x128xf32>
    %21 = vector.broadcast %19 : vector<1x128xf32> to vector<8x128xf32>
    %22 = arith.addf %20, %21 : vector<8x128xf32>
    %c0_17 = arith.constant 0 : index
    %c0_18 = arith.constant 0 : index
    %23 = vector.load %arg8[%c0_17, %c0_18] : memref<8x128xf32, #tpu.memory_space<vmem>>, vector<8x128xf32>
    tpu.vector_store %arg8[%c0_17, %c0_18], %22 {strides = array<i32>} : memref<8x128xf32, #tpu.memory_space<vmem>>, vector<8x128xf32>,
    return
  }
  func.func @transform_0(%arg0: i32) -> (i32, i32) {
    %c0_i32 = arith.constant 0 : i32
    %c0_i32_0 = arith.constant 0 : i32
    return %arg0, %c0_i32 : i32, i32
  }
  func.func @transform_1(%arg0: i32) -> (i32, i32) {
    %c0_i32 = arith.constant 0 : i32
    %c0_i32_0 = arith.constant 0 : i32
    %c0_i32_1 = arith.constant 0 : i32
    return %c0_i32, %c0_i32_0 : i32, i32
  }
  func.func @transform_2(%arg0: i32) -> (i32, i32) {
    %c0_i32 = arith.constant 0 : i32
    %c0_i32_0 = arith.constant 0 : i32
    %c0_i32_1 = arith.constant 0 : i32
    return %c0_i32, %c0_i32_0 : i32, i32
  }
  func.func @transform_3(%arg0: i32) -> (i32, i32) {
    %c0_i32 = arith.constant 0 : i32
    %c0_i32_0 = arith.constant 0 : i32
    %c0_i32_1 = arith.constant 0 : i32
    return %c0_i32, %c0_i32_0 : i32, i32
  }
  func.func @transform_4(%arg0: i32) -> (i32, i32) {
    %c0_i32 = arith.constant 0 : i32
    %c0_i32_0 = arith.constant 0 : i32
    %c0_i32_1 = arith.constant 0 : i32
    return %c0_i32, %c0_i32_0 : i32, i32
  }
  func.func @transform_5(%arg0: i32) -> (i32, i32) {
    %c0_i32 = arith.constant 0 : i32
    %c0_i32_0 = arith.constant 0 : i32
    %c0_i32_1 = arith.constant 0 : i32
    return %c0_i32, %c0_i32_0 : i32, i32
  }
  func.func @transform_6(%arg0: i32) -> (i32, i32) {
    %c0_i32 = arith.constant 0 : i32
    %c0_i32_0 = arith.constant 0 : i32
    %c0_i32_1 = arith.constant 0 : i32
    return %c0_i32, %c0_i32_0 : i32, i32
  }
  func.func @transform_7(%arg0: i32) -> (i32, i32) {
    %c0_i32 = arith.constant 0 : i32
    %c0_i32_0 = arith.constant 0 : i32
    return %arg0, %c0_i32 : i32, i32
  }
}

</mosaic_0001>

<bundles_post_ra>
// kernel: tpu_custom_call.1
= control target key start
LH: loop header
LB: loop body
LE: loop exit
PB: predicated region body
PF: predicated region fallthrough
CT: control target
= control target key end

     0   :  { %6 = vsyncpa [#allocation3], 0  ;;  %s340_s0 = inlined_call_operand.hbm [shape: f32[8,128], index: 0, kind: input, shape index: {}]   ;;  %s341_s1 = inlined_call_operand.hbm [shape: f32[8,128], index: 1, kind: output, shape index: {}]  }
   0x1   :  { %7 = vsyncpa [#allocation4], 0  ;;  %s261_s6 = smov 0  }
   0x2 LB: > { %s144_s7 = sadd.s32 4294967295, %s247_s6   ;;  %p145_p0 = scmp.ge.s32.totalorder %s247_s6, 1  ;;  %s247_s6 = sphi %s261_s6, %s13_s6  }
   0x3   : > { %p60_p1 = scmp.lt.s32.totalorder %s247_s6, 3  ;;  %p275_p3 = scmp.eq.s32.totalorder %s144_s7, 0 }
   0x4   : > { %s249_s10 = smov [#allocation2]   ;;  %s179_s15 = scalar_lea.hbm %s340_s0, 128 }
   0x5   : > { %p269_p2 = pnand %p145_p0, %p60_p1  ;;  %s73_s11 = sshll.u32 %s249_s10, 4  ;;  %s74_s11 = int_to_ptr.vmem [resolvable:$true] %s73_s11 }
   0x6   : > { %s346_s9 = scalar_select %p275_p3, 1, 0 }
   0x7   : > { %s345_s8 = scalar_select %p269_p2, 1, 0 }
   0x8   : > { %p161_p4 = pneg %p269_p2  ;;  %p180_p6 = scmp.ne.s32.totalorder %s340_s0, %s179_s15 }
   0x9   : > { %p186_p10 = scmp.lt.u32.totalorder %s179_s15, %s340_s0 }
   0xa   : > { %p283_p5 = pnand %p275_p3, %p161_p4 }
   0xc   : > { %p181_p7 = pneg %p283_p5 }
   0xe   : > { %p182_p8 = pnand %p181_p7, %p180_p6 }
  0x10   : > { %p183_p9 = pneg %p182_p8 }
  0x12   : > { %p188_p11 = pnand %p186_p10, %p183_p9 }
  0x14   : > { %191 = shalt.err (!%p188_p11)
}
  0x15   : > { %s192_s20 = scalar_lea.vmem %s74_s11, 128  ;;  %p200_p1 = scmp.lt.s32.totalorder %s74_s11, %s74_s11 }
  0x16   : > { %p193_p12 = scmp.ne.s32.totalorder %s74_s11, %s192_s20  ;;  %p201_p4 = scmp.lt.s32.totalorder %s192_s20, %s192_s20 }
  0x18   : > { %p195_p13 = pnand %p193_p12, %p181_p7  ;;  %p202_p3 = por %p201_p4, %p200_p1 }
  0x1a   : > { %p196_p0 = pneg %p195_p13 }
  0x1c   : > { %p203_p2 = pnand %p202_p3, %p196_p0 }
  0x1e   : > { %206 = shalt.err (!%p203_p2)
}
  0x1f   : > { %164 = dma.hbm_to_vmem [thread:$0]  (!%p283_p5), %s340_s0, 128, %s74_s11, [#allocation3]  }
  0x20   : > { %p348_p6 = scmp.ne.s32.totalorder %s345_s8, 0 }
  0x21   : > { %p349_p8 = scmp.ne.s32.totalorder (!%p348_p6), %s346_s9, 0 }
  0x22   : > { %86 = sbr.rel (%p348_p6) target bundleno = 67 (0x43), region = 24 }
  0x29   : > { %238 = dma.done.wait (%p349_p8), [#allocation3], 128  }
  0x2a   : > { %240 = vsyncadd (%p349_p8), [#allocation3], 4294967168  ;;  %s250_s23 = smov [#allocation5]   ;;  %p311_p2 = scmp.eq.s32.totalorder %s144_s7, 1  ;;  %v96_v0 = vld [vmem:[#allocation2] sm:$0xff] }
  0x2b   : > { %s105_s24 = sshll.u32 %s250_s23, 4  ;;  %97 = vst [vmem:[#allocation5] sm:$0xff] %v96_v0  ;;  %s106_s24 = int_to_ptr.vmem [resolvable:$true] %s105_s24 }
  0x2c   : > { %s207_s26 = scalar_lea.vmem %s106_s24, 128  ;;  %p214_p9 = scmp.lt.s32.totalorder %s106_s24, %s106_s24 }
  0x2d   : > { %p208_p3 = scmp.ne.s32.totalorder %s106_s24, %s207_s26  ;;  %p215_p10 = scmp.lt.s32.totalorder %s207_s26, %s207_s26 }
  0x2f   : > { %p209_p5 = pnand %p208_p3, %p311_p2  ;;  %p216_p11 = por %p215_p10, %p214_p9 }
  0x31   : > { %p210_p7 = pneg %p209_p5 }
  0x33   : > { %p217_p12 = pnand %p216_p11, %p210_p7 }
  0x35   : > { %220 = shalt.err (!%p217_p12)
}
  0x36   : > { %s221_s29 = scalar_lea.hbm %s341_s1, 128 }
  0x37   : > { %p222_p13 = scmp.ne.s32.totalorder %s341_s1, %s221_s29  ;;  %p227_p4 = scmp.lt.u32.totalorder %s221_s29, %s341_s1 }
  0x39   : > { %p223_p0 = pnand %p222_p13, %p311_p2 }
  0x3b   : > { %p224_p1 = pneg %p223_p0 }
  0x3d   : > { %p229_p6 = pnand %p227_p4, %p224_p1 }
  0x3f   : > { %232 = shalt.err (!%p229_p6)
}
  0x40   : > { %158 = dma.vmem_to_hbm [thread:$0]  (%p311_p2), %s106_s24, 128, %s341_s1, [#allocation4]  }
  0x41   : > { %242 = dma.done.wait (%p311_p2), [#allocation4], 128  }
  0x42   : > { %244 = vsyncadd (%p311_p2), [#allocation4], 4294967168 }
  0x43 PF: > { %s13_s6 = sadd.s32 1, %s247_s6  }
  0x44   : > { %p10_p8 = scmp.ge.s32.totalorder %s13_s6, 4  }
  0x46   :  { %12 = sbr.rel (!%p10_p8) target bundleno = 2 (0x2), region = 53 }
  0x4d   :  { %118 = vsyncpa [#allocation3], 1 }
  0x4e   :  { %120 = vsyncpa [#allocation3 + $0x1], 1 }
  0x4f   :  { %121 = vsyncpa [#allocation4], 1 }
  0x50   :  { %123 = vsyncpa [#allocation4 + $0x1], 1 }

// kernel: _nonlinear_head_padded.1
= control target key start
LH: loop header
LB: loop body
LE: loop exit
PB: predicated region body
PF: predicated region fallthrough
CT: control target
= control target key end

     0   :  { %12 = vsyncpa [#allocation3], 0  ;;  %s1269_s0 = inlined_call_operand.vmem [shape: f32[16,32], index: 0, kind: input, shape index: {}]   ;;  %s1270_s1 = inlined_call_operand.vmem [shape: bf16[32,128], index: 1, kind: input, shape index: {}]   ;;  %s1271_s2 = inlined_call_operand.vmem [shape: f32[1,128], index: 2, kind: input, shape index: {}]   ;;  %s1272_s3 = inlined_call_operand.hbm [shape: bf16[128,128], index: 3, kind: input, shape index: {}]   ;;  %s1273_s4 = inlined_call_operand.vmem [shape: f32[1,128], index: 4, kind: input, shape index: {}]   ;;  %s1274_s5 = inlined_call_operand.hbm [shape: bf16[128,128], index: 5, kind: input, shape index: {}]   ;;  %s1275_s6 = inlined_call_operand.vmem [shape: f32[1,128], index: 6, kind: input, shape index: {}]   ;;  %s1276_s7 = inlined_call_operand.hbm [shape: f32[16,128], index: 7, kind: output, shape index: {}]  }
   0x1   :  { %13 = vsyncpa [#allocation6], 0 }
   0x2   :  { %14 = vsyncpa [#allocation4], 0 }
   0x3   :  { %16 = vsyncpa [#allocation4 + $0x1], 0  ;;  %s1058_s24 = smov 0   ;;  %s1060_s25 = smov 0  }
   0x4   :  { %s1062_s26 = smov 0   ;;  %s1064_s27 = smov 0  }
   0x5 LB: > { %s1079_s28 = sadd.s32 4294967295, %s1009_s27   ;;  %s696_s29 = sadd.s32 4294967294, %s1009_s27   ;;  %s1009_s27 = sphi %s1064_s27, %s1296_s27   ;;  %s1005_s26 = sphi %s1062_s26, %s1295_s26   ;;  %s1001_s25 = sphi %s1060_s25, %s1294_s25   ;;  %s997_s24 = sphi %s1058_s24, %s1293_s24  }
   0x6   : > { %s1083_s30 = sadd.s32 1, %s1009_s27   ;;  %s181_s8 = sadd.s32 1, %s1005_s26 }
   0x7   : > { %s178_s9 = ssub.s32 %s1009_s27, %s1083_s30  ;;  %p191_p0 = scmp.ne.s32.totalorder %s1005_s26, %s1001_s25 }
   0x8   : > { %p179_p1 = scmp.eq.s32.totalorder %s178_s9, 0  ;;  %p192_p2 = scmp.eq.s32.totalorder %s1079_s28, 1 }
   0x9   : > { %p197_p3 = scmp.ne.s32.totalorder %s1001_s25, %s997_s24  ;;  %p198_p4 = scmp.eq.s32.totalorder %s696_s29, 1 }
   0xa   : > { %s1094_s10 = scalar_select %p179_p1, %s1005_s26, %s181_s8  }
   0xb   : > { %p1096_p5 = por %p192_p2, %p191_p0  ;;  %p1100_p6 = por %p198_p4, %p197_p3 }
   0xc   : > { %1280 = sst [smem:[#allocation11_spill]] %s1094_s10  ;;  %p697_p7 = scmp.ge.s32.totalorder %s1009_s27, 1 }
   0xd   : > { %s1281_s11 = scalar_select %p1096_p5, 1, 0 }
   0xe   : > { %s1282_s12 = scalar_select %p1100_p6, 1, 0 }
   0xf   : > { %p205_p8 = scmp.lt.s32.totalorder %s1009_s27, 3  ;;  %p1277_p9 = scmp.eq.s32.totalorder %s1079_s28, 0 }
  0x10   : > { %s1011_s14 = smov [#allocation2]   ;;  %s1012_s17 = smov [#allocation5]  }
  0x11   : > { %p1107_p10 = pnand %p697_p7, %p205_p8  ;;  %s223_s15 = sshll.u32 %s1011_s14, 4  ;;  %s224_s15 = int_to_ptr.vmem [resolvable:$true] %s223_s15 }
  0x12   : > { %s239_s18 = sshll.u32 %s1012_s17, 4  ;;  %s883_s21 = scalar_lea.hbm %s1272_s3, 1024  ;;  %s1119_s18 = int_to_ptr.vmem [resolvable:$true] %s239_s18 }
  0x13   : > { %s1283_s13 = scalar_select %p1107_p10, 1, 0 }
  0x14   : > { %p811_p11 = pneg %p1107_p10  ;;  %p884_p13 = scmp.ne.s32.totalorder %s1272_s3, %s883_s21 }
  0x15   : > { %p890_p3 = scmp.lt.u32.totalorder %s883_s21, %s1272_s3 }
  0x16   : > { %p1115_p12 = pnand %p1277_p9, %p811_p11 }
  0x18   : > { %p885_p0 = pneg %p1115_p12 }
  0x1a   : > { %p886_p1 = pnand %p885_p0, %p884_p13 }
  0x1c   : > { %p887_p2 = pneg %p886_p1 }
  0x1e   : > { %p892_p4 = pnand %p890_p3, %p887_p2 }
  0x20   : > { %895 = shalt.err (!%p892_p4)
}
  0x21   : > { %s896_s9 = scalar_lea.vmem %s224_s15, 1024  ;;  %p904_p9 = scmp.lt.s32.totalorder %s224_s15, %s224_s15 }
  0x22   : > { %p897_p7 = scmp.ne.s32.totalorder %s224_s15, %s896_s9  ;;  %p905_p6 = scmp.lt.s32.totalorder %s896_s9, %s896_s9 }
  0x24   : > { %p899_p8 = pnand %p897_p7, %p885_p0  ;;  %p906_p5 = por %p905_p6, %p904_p9 }
  0x26   : > { %p900_p11 = pneg %p899_p8 }
  0x28   : > { %p907_p10 = pnand %p906_p5, %p900_p11 }
  0x2a   : > { %910 = shalt.err (!%p907_p10)
}
  0x2b   : > { %s1013_s14 = smov 64   ;;  %s1014_s17 = smov 4  }
  0x2c   : > { %814 = dma.hbm_to_vmem [thread:$0]  (!%p1115_p12), %s1272_s3, 1024, %s224_s15, [#allocation3], %s1013_s14, %s1013_s14, %s1014_s17  }
  0x2d   : > { %s911_s23 = scalar_lea.hbm %s1274_s5, 1024 }
  0x2e   : > { %p912_p13 = scmp.ne.s32.totalorder %s1274_s5, %s911_s23  ;;  %p918_p9 = scmp.lt.u32.totalorder %s911_s23, %s1274_s5 }
  0x30   : > { %p914_p5 = pnand %p912_p13, %p885_p0 }
  0x32   : > { %p915_p6 = pneg %p914_p5 }
  0x34   : > { %p920_p10 = pnand %p918_p9, %p915_p6 }
  0x36   : > { %923 = shalt.err (!%p920_p10)
}
  0x37   : > { %s924_s15 = scalar_lea.vmem %s1119_s18, 1024  ;;  %p932_p4 = scmp.lt.s32.totalorder %s1119_s18, %s1119_s18 }
  0x38   : > { %p925_p1 = scmp.ne.s32.totalorder %s1119_s18, %s924_s15  ;;  %p933_p7 = scmp.lt.s32.totalorder %s924_s15, %s924_s15 }
  0x3a   : > { %p927_p2 = pnand %p925_p1, %p885_p0  ;;  %p934_p8 = por %p933_p7, %p932_p4 }
  0x3c   : > { %p928_p3 = pneg %p927_p2 }
  0x3e   : > { %p935_p11 = pnand %p934_p8, %p928_p3 }
  0x40   : > { %938 = shalt.err (!%p935_p11)
}
  0x41   : > { %817 = dma.hbm_to_vmem [thread:$0]  (!%p1115_p12), %s1274_s5, 1024, %s1119_s18, [#allocation6], %s1013_s14, %s1013_s14, %s1014_s17  }
  0x42   : > { %p1285_p13 = scmp.ne.s32.totalorder %s1283_s13, 0 }
  0x43   : > { %p1286_p5 = scmp.eq.s32.totalorder (!%p1285_p13), %s1079_s28, 0 }
  0x44   : > { %265 = sbr.rel (%p1285_p13) target bundleno = 754 (0x2f2), region = 48 }
  0x4b   : > { %984 = dma.done.wait (%p1286_p5), [#allocation3], 1024   ;;  %p1287_p0 = pmov %p1286_p5 }
  0x4d   : > { %986 = vsyncadd (%p1287_p0), [#allocation3], 4294966272  ;;  %p1288_p6 = pmov %p1287_p0 }
  0x4e   : > { %p1289_p9 = pmov %p1287_p0 }
  0x4f   : > { %988 = dma.done.wait (%p1288_p6), [#allocation6], 1024  }
  0x50   : > { %990 = vsyncadd (%p1289_p9), [#allocation6], 4294966272  ;;  %p300_p10 = scmp.lt.s32.totalorder %s1079_s28, 1  ;;  %v1015_v0 = vmov 0.0   ;;  %vm1016_vm0 = vmmov 0   ;;  %v865_v1 = vld [vmem:[%s1270_s1] sm:$0xff]  }
  0x51   : > { %753 = vmatprep.subr.bf16.mxu0 %v1015_v0  ;;  %757 = vmatprep.mubr.msk.bf16.mxu0 %vm1016_vm0, %v1015_v0  ;;  %v866_v2 = vld [vmem:[%s1270_s1 + $0x8] sm:$0xff]   ;;  %v867_v4 = vld [vmem:[#allocation2] sm:$0xff]   ;;  %vm330_vm1 = vcmask 261120   ;;  %v869_v7 = vld [vmem:[#allocation2 + $0x10] sm:$0xff]   ;;  %s297_s10 = sand.u32 1, %s1001_s25   ;;  %s729_s18 = sshll.u32 %s1079_s28, 7 }
  0x52   : > { %s301_s13 = scalar_select %p300_p10, %s1079_s28, 1  ;;  %761 = vmatprep.subr.bf16.mxu1 %v1015_v0  ;;  %777 = vmatprep.mubr.msk.bf16.mxu1 %vm1016_vm0, %v1015_v0  ;;  %v868_v6 = vld [vmem:[#allocation2 + $0x8] sm:$0xff]   ;;  %v870_v8 = vld [vmem:[#allocation2 + $0x18] sm:$0xff]   ;;  %v871_v9 = vld [vmem:[#allocation2 + $0x20] sm:$0xff]  }
  0x53   : > { %754 = vmatpush3.bf16.msra.mxu0 %v865_v1  ;;  %762 = vmatpush3.bf16.msra.mxu1 %v867_v4  ;;  %v872_v10 = vld [vmem:[#allocation2 + $0x28] sm:$0xff]   ;;  %v873_v11 = vld [vmem:[#allocation2 + $0x30] sm:$0xff]   ;;  %v874_v12 = vld [vmem:[#allocation2 + $0x38] sm:$0xff]   ;;  %s704_s19 = sshll.u32 %s297_s10, 3  ;;  %s1227_s22 = scalar_lea.hbm %s1276_s7, %s729_s18 }
  0x54   : > { %s705_s16 = sshll.u32 %s301_s13, 3  ;;  %755 = vmatprep.subr.bf16.mxu0 %v1015_v0  ;;  %763 = vmatprep.subr.bf16.mxu1 %v1015_v0  ;;  %v875_v13 = vld [vmem:[#allocation5] sm:$0xff]   ;;  %v876_v14 = vld [vmem:[#allocation5 + $0x8] sm:$0xff]   ;;  %v877_v15 = vld [vmem:[#allocation5 + $0x10] sm:$0xff]   ;;  %s299_s14 = scalar_lea.vmem [#allocation7], %s704_s19 }
  0x55   : > { %s303_s17 = scalar_lea.vmem %s1269_s0, %s705_s16  ;;  %v878_v16 = vld [vmem:[#allocation5 + $0x18] sm:$0xff]   ;;  %v879_v17 = vld [vmem:[#allocation5 + $0x20] sm:$0xff]   ;;  %v880_v18 = vld [vmem:[#allocation5 + $0x28] sm:$0xff]   ;;  %s602_s23 = scalar_lea.sflag [#allocation4], %s297_s10 }
  0x56   : > { %v305_v3 = vld [vmem:[%s303_s17] sm:$0xff]  ;;  %v881_v27 = vld [vmem:[#allocation5 + $0x30] sm:$0xff]   ;;  %v882_v28 = vld [vmem:[#allocation5 + $0x38] sm:$0xff]   ;;  %s615_s17 = sshll.u32 %s299_s14, 4  ;;  %p1290_p1 = scmp.ne.s32.totalorder %s1281_s11, 0  ;;  %s1229_s17 = int_to_ptr.vmem [resolvable:$true] %s615_s17 }
  0x57   : > { %v306_v5 = vpack.c.bf16 %v305_v3, %v305_v3  ;;  %756 = vmatpush3.bf16.msra.mxu0 %v866_v2  ;;  %764 = vmatpush3.bf16.msra.mxu1 %v868_v6  ;;  %v706_v19 = vld [vmem:[%s1271_s2] ss:$0 sm:$0xff]  ;;  %s939_s28 = scalar_lea.vmem %s1229_s17, 128  ;;  %s1017_s29 = smov [#allocation7]  }
  0x58   : > { %781 = vmatprep.subr.bf16.mxu0 %v1015_v0  ;;  %765 = vmatprep.subr.bf16.mxu1 %v1015_v0  ;;  %v710_v29 = vld [vmem:[%s1273_s4] ss:$0 sm:$0xff]  ;;  %p940_p12 = scmp.ne.s32.totalorder %s1229_s17, %s939_s28  ;;  %s943_s8 = sshll.u32 %s1017_s29, 4  ;;  %s944_s8 = int_to_ptr.vmem [resolvable:$false] %s943_s8 }
  0x59   : > { %v719_v37 = vld [vmem:[%s1275_s6] ss:$0 sm:$0xff]  ;;  %s945_s9 = scalar_lea.vmem %s944_s8, 256  ;;  %p946_p4 = scmp.lt.s32.totalorder %s1229_s17, %s944_s8 }
  0x5a   : > { %758 = vmatmul.mubr.msk.bf16.vlgmr.msra.gmra.mrb[0].mxu0 %vm330_vm1, %v306_v5  ;;  %p941_p2 = pnand %p940_p12, %p1290_p1  ;;  %p947_p7 = scmp.lt.s32.totalorder %s945_s9, %s939_s28 }
  0x5b   : > { %797 = vmatprep.mubr.msk.bf16.mxu0 %vm1016_vm0, %v1015_v0  ;;  %766 = vmatpush3.bf16.msra.mxu1 %v869_v7 }
  0x5c   : > { %767 = vmatprep.subr.bf16.mxu1 %v1015_v0  ;;  %782 = vmatpush3.bf16.msra.mxu0 %v875_v13  ;;  %p942_p3 = pneg %p941_p2  ;;  %p948_p8 = por %p947_p7, %p946_p4 }
  0x5d   : > { %783 = vmatprep.subr.bf16.mxu0 %v1015_v0 }
  0x5e   : > { %p949_p11 = pnand %p948_p8, %p942_p3 }
  0x5f   : > { %768 = vmatpush3.bf16.msra.mxu1 %v870_v8 }
  0x60   : > { %769 = vmatprep.subr.bf16.mxu1 %v1015_v0  ;;  %784 = vmatpush3.bf16.msra.mxu0 %v876_v14 }
  0x61   : > { %785 = vmatprep.subr.bf16.mxu0 %v1015_v0 }
  0x63   : > { %770 = vmatpush3.bf16.msra.mxu1 %v871_v9 }
  0x64   : > { %771 = vmatprep.subr.bf16.mxu1 %v1015_v0  ;;  %786 = vmatpush3.bf16.msra.mxu0 %v877_v15 }
  0x65   : > { %787 = vmatprep.subr.bf16.mxu0 %v1015_v0 }
  0x67   : > { %772 = vmatpush3.bf16.msra.mxu1 %v872_v10 }
  0x68   : > { %773 = vmatprep.subr.bf16.mxu1 %v1015_v0  ;;  %788 = vmatpush3.bf16.msra.mxu0 %v878_v16 }
  0x69   : > { %789 = vmatprep.subr.bf16.mxu0 %v1015_v0 }
  0x6b   : > { %774 = vmatpush3.bf16.msra.mxu1 %v873_v11 }
  0x6c   : > { %775 = vmatprep.subr.bf16.mxu1 %v1015_v0  ;;  %790 = vmatpush3.bf16.msra.mxu0 %v879_v17 }
  0x6d   : > { %791 = vmatprep.subr.bf16.mxu0 %v1015_v0 }
  0x6f   : > { %776 = vmatpush3.bf16.msra.mxu1 %v874_v12 }
  0x70   : > { %792 = vmatpush3.bf16.msra.mxu0 %v880_v18 }
  0x71   : > { %793 = vmatprep.subr.bf16.mxu0 %v1015_v0 }
  0x74   : > { %794 = vmatpush3.bf16.msra.mxu0 %v881_v27 }
  0x75   : > { %795 = vmatprep.subr.bf16.mxu0 %v1015_v0 }
  0x78   : > { %796 = vmatpush3.bf16.msra.mxu0 %v882_v28 }
 0x12d   : > { %v368_v20 = vpop.f32.mrb[0].mxu0 }
 0x12e   : > { %v369_v21 = vadd.f32 %v706_v19, %v368_v20  ;;  %v759_v22 = vpop.f32.mrb[1].mxu0 }
 0x12f   : > { %v371_v23 = vpop.f32.mrb[2].mxu0 }
 0x130   : > { %v374_v24 = vmax.f32 %v369_v21, 0.0  ;;  %v760_v25 = vpop.f32.mrb[3].mxu0 }
 0x132   : > { %v375_v26 = vpack.c.bf16 %v374_v24, %v374_v24 }
 0x134   : > { %778 = vmatmul.mubr.bf16.vlgmr.msra.gmra.mrb[0].mxu1 %v375_v26 }
 0x207   : > { %v481_v30 = vpop.f32.mrb[0].mxu1 }
 0x208   : > { %v482_v31 = vadd.f32 %v710_v29, %v481_v30  ;;  %v779_v32 = vpop.f32.mrb[1].mxu1 }
 0x209   : > { %v484_v33 = vpop.f32.mrb[2].mxu1 }
 0x20a   : > { %v487_v34 = vmax.f32 %v482_v31, 0.0  ;;  %v780_v35 = vpop.f32.mrb[3].mxu1 }
 0x20c   : > { %v488_v36 = vpack.c.bf16 %v487_v34, %v487_v34 }
 0x20e   : > { %798 = vmatmul.mubr.bf16.vlgmr.msra.gmra.mrb[4].mxu0 %v488_v36 }
 0x2e1   : > { %v594_v38 = vpop.f32.mrb[4].mxu0 }
 0x2e2   : > { %v595_v39 = vadd.f32 %v719_v37, %v594_v38  ;;  %v799_v40 = vpop.f32.mrb[5].mxu0 }
 0x2e3   : > { %v597_v41 = vpop.f32.mrb[6].mxu0 }
 0x2e4   : > { %600 = vst [vmem:[%s299_s14] sm:$0xff] %v595_v39  ;;  %v800_v42 = vpop.f32.mrb[7].mxu0 }
 0x2e5   : > { %952 = shalt.err (!%p949_p11)
}
 0x2e6   : > { %s953_s15 = scalar_lea.hbm %s1227_s22, 128  ;;  %s957_s13 = scalar_lea.hbm %s1276_s7, 256 }
 0x2e7   : > { %p954_p13 = scmp.ne.s32.totalorder %s1227_s22, %s953_s15  ;;  %p958_p6 = scmp.lt.u32.totalorder %s1227_s22, %s1276_s7 }
 0x2e8   : > { %p959_p9 = scmp.lt.u32.totalorder %s957_s13, %s953_s15  ;;  %p961_p12 = scmp.lt.u32.totalorder %s953_s15, %s1227_s22 }
 0x2e9   : > { %p955_p5 = pnand %p954_p13, %p1290_p1 }
 0x2ea   : > { %p960_p10 = por %p959_p9, %p958_p6 }
 0x2eb   : > { %p956_p0 = pneg %p955_p5 }
 0x2ec   : > { %p962_p2 = por %p961_p12, %p960_p10 }
 0x2ee   : > { %p963_p3 = pnand %p962_p2, %p956_p0 }
 0x2f0   : > { %966 = shalt.err (!%p963_p3)
}
 0x2f1   : > { %809 = dma.vmem_to_hbm [thread:$0]  (%p1290_p1), %s1229_s17, 128, %s1227_s22, %s602_s23  }
 0x2f2 PF: > { %p826_p4 = scmp.ge.s32.totalorder %s1009_s27, 2  ;;  %s627_s14 = sand.u32 1, %s997_s24  }
 0x2f3   : > { %p1291_p7 = scmp.ne.s32.totalorder %s1282_s12, 0  ;;  %s628_s20 = scalar_lea.sflag [#allocation4], %s627_s14 }
 0x2f5   : > { %p819_p8 = pnand %p826_p4, %p1291_p7 }
 0x2f7   : > { %992 = dma.done.wait (!%p819_p8), %s628_s20, 128  }
 0x2f8   : > { %994 = vsyncadd (!%p819_p8), %s628_s20, 4294967168  ;;  %s1292_s21 = sld [smem:[#allocation11_spill]]  ;;  %p19_p11 = scmp.ge.s32.totalorder %s1083_s30, 4  }
 0x2f9   : > { %s1293_s24 = smov %s1001_s25  ;;  %s1294_s25 = smov %s1005_s26 }
 0x2fa   : > { %s1296_s27 = smov %s1083_s30  ;;  %21 = sbr.rel (!%p19_p11) target bundleno = 5 (0x5), region = 92 }
 0x2fe   : > { %s1295_s26 = smov %s1292_s21 }
 0x301   :  { %633 = vsyncpa [#allocation3], 1 }
 0x302   :  { %635 = vsyncpa [#allocation3 + $0x1], 1 }
 0x303   :  { %636 = vsyncpa [#allocation6], 1 }
 0x304   :  { %637 = vsyncpa [#allocation4], 1 }
 0x305   :  { %639 = vsyncpa [#allocation4 + $0x1], 1 }

</bundles_post_ra>
